<compile_context>
chip_gen: v7x
topology: tpu7x:2x2x1
jax: 0.10.0
libtpu: 0.0.40
codegen_flags: <defaults>
</compile_context>

<pallas_src>
import jax
import jax.numpy as jnp
from jax.experimental import pallas as pl
from jax.experimental.pallas import tpu as pltpu

HIDDEN = 128


def _round_up(x, m):
    return ((x + m - 1) // m) * m


# ----------------------------------------------------------------------------
# Pallas kernel: trunk MLP + single fused Q-head matmul (dueling combine is
# pre-folded into the weights). Writes one lane-dense (TB, out_w) slab.
# ----------------------------------------------------------------------------
def _bqn_kernel(x_ref, w1_ref, w2_ref, wq_ref, b_ref, q_ref):
    hidden = w1_ref.shape[1]
    out_w = wq_ref.shape[1]
    cdt = w1_ref.dtype  # compute dtype of the matmul operands (f32 or bf16)

    b1 = b_ref[0:1, :hidden]      # (1, hidden)  f32
    b2 = b_ref[1:2, :hidden]      # (1, hidden)  f32
    bq = b_ref[2:3, :out_w]       # (1, out_w)   f32

    # shared trunk: Linear -> ReLU -> Linear -> ReLU  (MXU matmuls, f32 accum)
    h1 = jnp.dot(x_ref[...], w1_ref[...], preferred_element_type=jnp.float32) + b1
    h1 = jnp.maximum(h1, 0.0).astype(cdt)
    h2 = jnp.dot(h1, w2_ref[...], preferred_element_type=jnp.float32) + b2
    h2 = jnp.maximum(h2, 0.0).astype(cdt)

    # ONE fused MXU matmul producing Q directly (value + all branches,
    # dueling combine folded into wq / bq on the host). Padded cols are zero.
    q = jnp.dot(h2, wq_ref[...], preferred_element_type=jnp.float32) + bq
    q_ref[...] = q.astype(q_ref.dtype)   # single unmasked lane-dense store


# ----------------------------------------------------------------------------
# Host-side parameter packing. Call ONCE per weight update, reuse the result.
#   wq[:, i*n + j] = wv[:,0] + wa[i,:,j] - mean_k wa[i,:,k]   (exact algebra)
#   bq[i*n + j]    = bv      + ba[i,j]   - mean_k ba[i,k]
# ----------------------------------------------------------------------------
def pack_params(params, compute_dtype=jnp.float32):
    w1, b1, w2, b2, wv, bv, wa, ba = params
    obs, hidden = w1.shape
    ac_dim, _, n = wa.shape

    out_w = _round_up(ac_dim * n, 128)
    bw = max(hidden, out_w)

    # fold dueling combine into the head weights
    wq = wv[None, :, :] + wa - wa.mean(axis=2, keepdims=True)      # (ac_dim, hidden, n)
    wq = jnp.transpose(wq, (1, 0, 2)).reshape(hidden, ac_dim * n)  # (hidden, ac_dim*n)
    wq = jnp.pad(wq, ((0, 0), (0, out_w - ac_dim * n)))            # (hidden, out_w)

    ba2 = ba[:, 0, :]                                              # (ac_dim, n)
    bq = bv[0, 0] + ba2 - ba2.mean(axis=1, keepdims=True)          # (ac_dim, n)
    bq = bq.reshape(1, ac_dim * n)
    bq = jnp.pad(bq, ((0, 0), (0, bw - ac_dim * n)))               # (1, bw)

    def pad_row(r):
        return jnp.pad(r, ((0, 0), (0, bw - r.shape[1])))

    # biases stay f32 (tiny); rows: b1, b2, bq
    biases = jnp.concatenate([pad_row(b1), pad_row(b2), bq], axis=0).astype(jnp.float32)

    cdt = jnp.dtype(compute_dtype)
    packed = (w1.astype(cdt), w2.astype(cdt), wq.astype(cdt), biases)
    dims = dict(obs=obs, hidden=hidden, ac_dim=ac_dim, n=n,
                out_w=out_w, bw=bw, compute_dtype=cdt)
    return packed, dims


def _choose_batch_tile(B, max_tile=2048):
    if B <= 512:
        return B  # single small step; splitting only adds per-step overhead
    # >= 2 grid steps so both v7x TensorCores get work; tiles multiple of 8.
    n_steps = max(2, pl.cdiv(B, max_tile))
    return _round_up(pl.cdiv(B, n_steps), 8)


def branching_qnet_forward_packed(x, packed, dims, *, max_tile=2048,
                                  out_dtype=None, return_padded=False):
    w1, w2, wq, biases = packed
    obs, hidden = dims["obs"], dims["hidden"]
    ac_dim, n = dims["ac_dim"], dims["n"]
    out_w, bw = dims["out_w"], dims["bw"]
    cdt = dims["compute_dtype"]
    if out_dtype is None:
        out_dtype = cdt

    B = x.shape[0]
    x = x.astype(cdt)

    tb = _choose_batch_tile(B, max_tile)
    grid = (pl.cdiv(B, tb),)

    isz = jnp.dtype(cdt).itemsize
    flops = 2 * B * (obs * hidden + hidden * hidden + hidden * out_w)
    bytes_accessed = int(isz * (x.size + w1.size + w2.size + wq.size)
                         + 4 * biases.size
                         + jnp.dtype(out_dtype).itemsize * B * out_w)

    # NOTE: constant-index weight inputs could be single-buffered via
    # pipeline_mode=pl.Buffered(1); omitted here (VMEM headroom is ample).
    q_flat = pl.pallas_call(
        _bqn_kernel,
        out_shape=jax.ShapeDtypeStruct((B, out_w), out_dtype),
        grid_spec=pltpu.PrefetchScalarGridSpec(
            num_scalar_prefetch=0,
            grid=grid,
            in_specs=[
                pl.BlockSpec((tb, obs), lambda i: (i, 0)),          # x: batch-tiled
                pl.BlockSpec((obs, hidden), lambda i: (0, 0)),      # w1: resident
                pl.BlockSpec((hidden, hidden), lambda i: (0, 0)),   # w2: resident
                pl.BlockSpec((hidden, out_w), lambda i: (0, 0)),    # folded Q-head W
                pl.BlockSpec((3, bw), lambda i: (0, 0)),            # packed f32 biases
            ],
            out_specs=pl.BlockSpec((tb, out_w), lambda i: (i, 0)),
        ),
        compiler_params=pltpu.CompilerParams(
            dimension_semantics=("parallel",)),
        cost_estimate=pl.CostEstimate(
            flops=flops, transcendentals=0, bytes_accessed=bytes_accessed),
    )(x, w1, w2, wq, biases)

    if return_padded:
        # let the consumer read the padded (B, out_w) slab directly and avoid
        # an extra HBM slice/reshape pass
        return q_flat
    return q_flat[:, :ac_dim * n].reshape(B, ac_dim, n)


def branching_qnet_forward(x, params, *, compute_dtype=jnp.float32, **kw):
    """Convenience wrapper; prefer pack_params() once + *_packed per call."""
    packed, dims = pack_params(params, compute_dtype=compute_dtype)
    return branching_qnet_forward_packed(x, packed, dims, **kw)


# ----------------------------------------------------------------------------
# Deterministic parameter init (PyTorch-style uniform(-1/sqrt(fan_in), +...))
# ----------------------------------------------------------------------------
def init_params(key, obs, ac_dim, n, hidden=HIDDEN):
    def linear(k, fan_in, fan_out):
        kw, kb = jax.random.split(k)
        bound = 1.0 / jnp.sqrt(fan_in)
        w = jax.random.uniform(kw, (fan_in, fan_out), jnp.float32, -bound, bound)
        b = jax.random.uniform(kb, (1, fan_out), jnp.float32, -bound, bound)
        return w, b

    keys = jax.random.split(key, 3 + ac_dim)
    w1, b1 = linear(keys[0], obs, hidden)
    w2, b2 = linear(keys[1], hidden, hidden)
    wv, bv = linear(keys[2], hidden, 1)

    wa_list, ba_list = [], []
    for i in range(ac_dim):
        w, b = linear(keys[3 + i], hidden, n)
        wa_list.append(w)
        ba_list.append(b)                       # (1, n)
    wa = jnp.stack(wa_list, axis=0)             # (ac_dim, hidden, n)
    ba = jnp.stack(ba_list, axis=0)             # (ac_dim, 1, n)
    return w1, b1, w2, b2, wv, bv, wa, ba


# Pure-JAX reference matching the PyTorch forward, for verification.
def reference_forward(x, params):
    w1, b1, w2, b2, wv, bv, wa, ba = params
    h = jnp.maximum(x @ w1 + b1, 0.0)
    h = jnp.maximum(h @ w2 + b2, 0.0)
    value = h @ wv + bv                                           # (B, 1)
    advs = jnp.einsum("bd,adn->ban", h, wa) + ba[:, 0, :][None]   # (B, ac_dim, n)
    return value[:, :, None] + advs - advs.mean(axis=2, keepdims=True)


# TODO(synk): update_model / StateDictHelper are host-side training utilities
# (state-dict soft-update), not part of the forward pass, so they are not
# translated to Pallas.

if __name__ == "__main__":
    # LunarLanderContinuous-style sizes: obs=8, ac_dim=2 branches, n=6 bins.
    B, OBS, AC_DIM, N = 8, 8, 2, 6

    key = jax.random.PRNGKey(0)
    kx, kp, kx2 = jax.random.split(key, 3)
    x = jax.random.normal(kx, (B, OBS), jnp.float32)
    params = init_params(kp, OBS, AC_DIM, N)

    # --- exact f32 path, small batch (single grid step) -----------------------
    packed32, dims32 = pack_params(params, compute_dtype=jnp.float32)
    q = jax.block_until_ready(branching_qnet_forward_packed(x, packed32, dims32))
    q_ref = reference_forward(x, params)
    assert q.shape == (B, AC_DIM, N)
    assert jnp.allclose(q, q_ref, atol=1e-4, rtol=1e-4), "f32 mismatch vs reference"

    # --- bf16 path, larger non-multiple batch (multi-step grid + ragged tail) --
    B2 = 1000
    x2 = jax.random.normal(kx2, (B2, OBS), jnp.float32)
    packed16, dims16 = pack_params(params, compute_dtype=jnp.bfloat16)
    fwd_bf16 = jax.jit(lambda xx: branching_qnet_forward_packed(
        xx, packed16, dims16, max_tile=2048))
    q2 = jax.block_until_ready(fwd_bf16(x2))
    q2_ref = reference_forward(x2, params)
    assert q2.shape == (B2, AC_DIM, N)
    assert jnp.allclose(q2.astype(jnp.float32), q2_ref, atol=1e-1, rtol=1e-1), \
        "bf16 mismatch vs reference"

    print("KERNEL_OK")
</pallas_src>

<mosaic_0001>
module attributes {stable_mosaic.version = 11 : i64} {
  func.func @_bqn_kernel(%arg0: i32, %arg1: memref<8x8xf32, #tpu.memory_space<vmem>>, %arg2: memref<8x128xf32, #tpu.memory_space<vmem>>, %arg3: memref<128x128xf32, #tpu.memory_space<vmem>>, %arg4: memref<128x128xf32, #tpu.memory_space<vmem>>, %arg5: memref<3x128xf32, #tpu.memory_space<vmem>>, %arg6: memref<8x128xf32, #tpu.memory_space<vmem>>) attributes {dimension_semantics = [#tpu.dimension_semantics<parallel>], iteration_bounds = array<i64: 1>, scalar_prefetch = 0 : i64, scratch_operands = 0 : i64, tpu.core_type = #tpu.core_type<tc>, window_params = [{transform_indices = @transform_0, window_bounds = array<i64: 8, 8>}, {pipeline_mode = #tpu.pipeline_mode<synchronous>, transform_indices = @transform_1, window_bounds = array<i64: 8, 128>}, {pipeline_mode = #tpu.pipeline_mode<synchronous>, transform_indices = @transform_2, window_bounds = array<i64: 128, 128>}, {pipeline_mode = #tpu.pipeline_mode<synchronous>, transform_indices = @transform_3, window_bounds = array<i64: 128, 128>}, {pipeline_mode = #tpu.pipeline_mode<synchronous>, transform_indices = @transform_4, window_bounds = array<i64: 3, 128>}, {transform_indices = @transform_5, window_bounds = array<i64: 8, 128>}]} {
    %c0 = arith.constant 0 : index
    %c0_0 = arith.constant 0 : index
    %0 = vector.load %arg5[%c0, %c0_0] : memref<3x128xf32, #tpu.memory_space<vmem>>, vector<1x128xf32>
    %c1 = arith.constant 1 : index
    %c0_1 = arith.constant 0 : index
    %1 = vector.load %arg5[%c1, %c0_1] : memref<3x128xf32, #tpu.memory_space<vmem>>, vector<1x128xf32>
    %c2 = arith.constant 2 : index
    %c0_2 = arith.constant 0 : index
    %2 = vector.load %arg5[%c2, %c0_2] : memref<3x128xf32, #tpu.memory_space<vmem>>, vector<1x128xf32>
    %c0_3 = arith.constant 0 : index
    %c0_4 = arith.constant 0 : index
    %3 = vector.load %arg1[%c0_3, %c0_4] : memref<8x8xf32, #tpu.memory_space<vmem>>, vector<8x8xf32>
    %c0_5 = arith.constant 0 : index
    %c0_6 = arith.constant 0 : index
    %4 = vector.load %arg2[%c0_5, %c0_6] : memref<8x128xf32, #tpu.memory_space<vmem>>, vector<8x128xf32>
    %cst = arith.constant dense<0.000000e+00> : vector<8x128xf32>
    %5 = tpu.matmul %3, %4, %cst {dimension_numbers = #tpu.dot_dimension_numbers<[1], [0], [0], [1], [0, 0, 1, 1], [], []>} : vector<8x8xf32>, vector<8x128xf32>, vector<8x128xf32> -> vector<8x128xf32>
    %6 = vector.broadcast %0 : vector<1x128xf32> to vector<8x128xf32>
    %7 = arith.addf %5, %6 : vector<8x128xf32>
    %cst_7 = arith.constant 0.000000e+00 : f32
    %8 = vector.broadcast %cst_7 : f32 to vector<8x128xf32>
    %9 = arith.maximumf %7, %8 : vector<8x128xf32>
    %c0_8 = arith.constant 0 : index
    %c0_9 = arith.constant 0 : index
    %10 = vector.load %arg3[%c0_8, %c0_9] : memref<128x128xf32, #tpu.memory_space<vmem>>, vector<128x128xf32>
    %cst_10 = arith.constant dense<0.000000e+00> : vector<8x128xf32>
    %11 = tpu.matmul %9, %10, %cst_10 {dimension_numbers = #tpu.dot_dimension_numbers<[1], [0], [0], [1], [0, 0, 1, 1], [], []>} : vector<8x128xf32>, vector<128x128xf32>, vector<8x128xf32> -> vector<8x128xf32>
    %12 = vector.broadcast %1 : vector<1x128xf32> to vector<8x128xf32>
    %13 = arith.addf %11, %12 : vector<8x128xf32>
    %cst_11 = arith.constant 0.000000e+00 : f32
    %14 = vector.broadcast %cst_11 : f32 to vector<8x128xf32>
    %15 = arith.maximumf %13, %14 : vector<8x128xf32>
    %c0_12 = arith.constant 0 : index
    %c0_13 = arith.constant 0 : index
    %16 = vector.load %arg4[%c0_12, %c0_13] : memref<128x128xf32, #tpu.memory_space<vmem>>, vector<128x128xf32>
    %cst_14 = arith.constant dense<0.000000e+00> : vector<8x128xf32>
    %17 = tpu.matmul %15, %16, %cst_14 {dimension_numbers = #tpu.dot_dimension_numbers<[1], [0], [0], [1], [0, 0, 1, 1], [], []>} : vector<8x128xf32>, vector<128x128xf32>, vector<8x128xf32> -> vector<8x128xf32>
    %18 = vector.broadcast %2 : vector<1x128xf32> to vector<8x128xf32>
    %19 = arith.addf %17, %18 : vector<8x128xf32>
    %c0_15 = arith.constant 0 : index
    %c0_16 = arith.constant 0 : index
    %20 = vector.load %arg6[%c0_15, %c0_16] : memref<8x128xf32, #tpu.memory_space<vmem>>, vector<8x128xf32>
    tpu.vector_store %arg6[%c0_15, %c0_16], %19 {strides = array<i32>} : memref<8x128xf32, #tpu.memory_space<vmem>>, vector<8x128xf32>,
    return
  }
  func.func @transform_0(%arg0: i32) -> (i32, i32) {
    %c0_i32 = arith.constant 0 : i32
    %c0_i32_0 = arith.constant 0 : i32
    return %arg0, %c0_i32 : i32, i32
  }
  func.func @transform_1(%arg0: i32) -> (i32, i32) {
    %c0_i32 = arith.constant 0 : i32
    %c0_i32_0 = arith.constant 0 : i32
    %c0_i32_1 = arith.constant 0 : i32
    return %c0_i32, %c0_i32_0 : i32, i32
  }
  func.func @transform_2(%arg0: i32) -> (i32, i32) {
    %c0_i32 = arith.constant 0 : i32
    %c0_i32_0 = arith.constant 0 : i32
    %c0_i32_1 = arith.constant 0 : i32
    return %c0_i32, %c0_i32_0 : i32, i32
  }
  func.func @transform_3(%arg0: i32) -> (i32, i32) {
    %c0_i32 = arith.constant 0 : i32
    %c0_i32_0 = arith.constant 0 : i32
    %c0_i32_1 = arith.constant 0 : i32
    return %c0_i32, %c0_i32_0 : i32, i32
  }
  func.func @transform_4(%arg0: i32) -> (i32, i32) {
    %c0_i32 = arith.constant 0 : i32
    %c0_i32_0 = arith.constant 0 : i32
    %c0_i32_1 = arith.constant 0 : i32
    return %c0_i32, %c0_i32_0 : i32, i32
  }
  func.func @transform_5(%arg0: i32) -> (i32, i32) {
    %c0_i32 = arith.constant 0 : i32
    %c0_i32_0 = arith.constant 0 : i32
    return %arg0, %c0_i32 : i32, i32
  }
}

</mosaic_0001>

<bundles_post_ra>
// kernel: tpu_custom_call.1
= control target key start
LH: loop header
LB: loop body
LE: loop exit
PB: predicated region body
PF: predicated region fallthrough
CT: control target
= control target key end

     0   :  { %10 = vsyncpa [#allocation3], 0  ;;  %s774_s0 = inlined_call_operand.hbm [shape: f32[8,8], index: 0, kind: input, shape index: {}]   ;;  %s775_s1 = inlined_call_operand.hbm [shape: f32[8,128], index: 1, kind: input, shape index: {}]   ;;  %s776_s2 = inlined_call_operand.hbm [shape: f32[128,128], index: 2, kind: input, shape index: {}]   ;;  %s777_s3 = inlined_call_operand.hbm [shape: f32[128,128], index: 3, kind: input, shape index: {}]   ;;  %s778_s4 = inlined_call_operand.vmem [shape: f32[3,128], index: 4, kind: input, shape index: {}]   ;;  %s779_s5 = inlined_call_operand.hbm [shape: f32[8,128], index: 5, kind: output, shape index: {}]  }
   0x1   :  { %11 = vsyncpa [#allocation6], 0 }
   0x2   :  { %12 = vsyncpa [#allocation9], 0 }
   0x3   :  { %13 = vsyncpa [#allocation4], 0  ;;  %s646_s18 = smov [#allocation5]   ;;  %s647_s20 = smov [#allocation2]  }
   0x4   :  { %s30_s19 = sshll.u32 %s646_s18, 4  ;;  %s20_s21 = sshll.u32 %s647_s20, 4  ;;  %s31_s19 = int_to_ptr.vmem [resolvable:$true] %s30_s19  ;;  %s21_s21 = int_to_ptr.vmem [resolvable:$true] %s20_s21 }
   0x5   :  { %s528_s24 = scalar_lea.hbm %s775_s1, 128 }
   0x6   :  { %p529_p0 = scmp.ne.s32.totalorder %s775_s1, %s528_s24  ;;  %p532_p1 = scmp.lt.u32.totalorder %s528_s24, %s775_s1 }
   0x8   :  { %p534_p2 = pnand %p532_p1, %p529_p0 }
   0xa   :  { %537 = shalt.err (!%p534_p2)
}
   0xb   :  { %s538_s29 = scalar_lea.vmem %s31_s19, 128  ;;  %p543_p4 = scmp.lt.s32.totalorder %s31_s19, %s31_s19 }
   0xc   :  { %p539_p3 = scmp.ne.s32.totalorder %s31_s19, %s538_s29  ;;  %p544_p5 = scmp.lt.s32.totalorder %s538_s29, %s538_s29 }
   0xe   :  { %p545_p6 = por %p544_p5, %p543_p4 }
  0x10   :  { %p546_p7 = pnand %p545_p6, %p539_p3 }
  0x12   :  { %549 = shalt.err (!%p546_p7)
}
  0x13   :  { %33 = dma.hbm_to_vmem [thread:$0]  %s775_s1, 128, %s31_s19, [#allocation6]  }
  0x14   :  { %s550_s9 = scalar_lea.hbm %s774_s0, 128 }
  0x15   :  { %p551_p8 = scmp.ne.s32.totalorder %s774_s0, %s550_s9  ;;  %p554_p9 = scmp.lt.u32.totalorder %s550_s9, %s774_s0 }
  0x17   :  { %p556_p10 = pnand %p554_p9, %p551_p8 }
  0x19   :  { %559 = shalt.err (!%p556_p10)
}
  0x1a   :  { %s560_s14 = scalar_lea.vmem %s21_s21, 128  ;;  %p565_p12 = scmp.lt.s32.totalorder %s21_s21, %s21_s21 }
  0x1b   :  { %p561_p11 = scmp.ne.s32.totalorder %s21_s21, %s560_s14  ;;  %p566_p13 = scmp.lt.s32.totalorder %s560_s14, %s560_s14 }
  0x1d   :  { %p567_p0 = por %p566_p13, %p565_p12 }
  0x1f   :  { %p568_p1 = pnand %p567_p0, %p561_p11 }
  0x21   :  { %571 = shalt.err (!%p568_p1)
}
  0x22   :  { %23 = dma.hbm_to_vmem [thread:$0]  %s774_s0, 128, %s21_s21, [#allocation3]  }
  0x23   :  { %s648_s16 = smov [#allocation7]   ;;  %s572_s20 = scalar_lea.hbm %s776_s2, 2048 }
  0x24   :  { %s39_s17 = sshll.u32 %s648_s16, 4  ;;  %p573_p2 = scmp.ne.s32.totalorder %s776_s2, %s572_s20  ;;  %s40_s17 = int_to_ptr.vmem [resolvable:$true] %s39_s17 }
  0x25   :  { %p576_p3 = scmp.lt.u32.totalorder %s572_s20, %s776_s2 }
  0x27   :  { %p578_p4 = pnand %p576_p3, %p573_p2 }
  0x29   :  { %581 = shalt.err (!%p578_p4)
}
  0x2a   :  { %s582_s26 = scalar_lea.vmem %s40_s17, 2048  ;;  %p587_p6 = scmp.lt.s32.totalorder %s40_s17, %s40_s17 }
  0x2b   :  { %p583_p5 = scmp.ne.s32.totalorder %s40_s17, %s582_s26  ;;  %p588_p7 = scmp.lt.s32.totalorder %s582_s26, %s582_s26 }
  0x2d   :  { %p589_p8 = por %p588_p7, %p587_p6 }
  0x2f   :  { %p590_p9 = pnand %p589_p8, %p583_p5 }
  0x31   :  { %593 = shalt.err (!%p590_p9)
}
  0x32   :  { %s649_s0 = smov 128   ;;  %s650_s21 = smov 8  }
  0x33   :  { %45 = dma.hbm_to_vmem [thread:$0]  %s776_s2, 2048, %s40_s17, [#allocation6], %s649_s0, %s649_s0, %s650_s21  }
  0x34   :  { %s651_s29 = smov [#allocation8]   ;;  %s594_s8 = scalar_lea.hbm %s777_s3, 2048 }
  0x35   :  { %s51_s30 = sshll.u32 %s651_s29, 4  ;;  %p595_p10 = scmp.ne.s32.totalorder %s777_s3, %s594_s8  ;;  %s52_s30 = int_to_ptr.vmem [resolvable:$true] %s51_s30 }
  0x36   :  { %p598_p11 = scmp.lt.u32.totalorder %s594_s8, %s777_s3 }
  0x38   :  { %p600_p12 = pnand %p598_p11, %p595_p10 }
  0x3a   :  { %603 = shalt.err (!%p600_p12)
}
  0x3b   :  { %s604_s13 = scalar_lea.vmem %s52_s30, 2048  ;;  %p609_p0 = scmp.lt.s32.totalorder %s52_s30, %s52_s30 }
  0x3c   :  { %p605_p13 = scmp.ne.s32.totalorder %s52_s30, %s604_s13  ;;  %p610_p1 = scmp.lt.s32.totalorder %s604_s13, %s604_s13 }
  0x3e   :  { %p611_p2 = por %p610_p1, %p609_p0 }
  0x40   :  { %p612_p3 = pnand %p611_p2, %p605_p13 }
  0x42   :  { %615 = shalt.err (!%p612_p3)
}
  0x43   :  { %57 = dma.hbm_to_vmem [thread:$0]  %s777_s3, 2048, %s52_s30, [#allocation9], %s649_s0, %s649_s0, %s650_s21  }
  0x44   :  { %638 = dma.done.wait [#allocation3], 128  }
  0x45   :  { %639 = vsyncadd [#allocation3], 4294967168 }
  0x46   :  { %640 = dma.done.wait [#allocation6], 2176  }
  0x47   :  { %641 = vsyncadd [#allocation6], 4294965120 }
  0x48   :  { %642 = dma.done.wait [#allocation9], 2048  }
  0x49   :  { %643 = vsyncadd [#allocation9], 4294965248  ;;  %v652_v0 = vmov 0.0   ;;  %vm653_vm0 = vmmov 0   ;;  %v654_v1 = vmov 0.0|0.0   ;;  %vm81_vm1 = vcmask 64512  }
  0x4a   :  { %395 = vmatprep.subr.mxu0 %v652_v0  ;;  %397 = vmatprep.mubr.msk.f32.mxu0 %vm653_vm0, %v652_v0  ;;  %v76_v2 = vld [vmem:[#allocation5] sm:$0xff]  ;;  %v75_v3 = vld [vmem:[#allocation2] sm:$0xff]  ;;  %v156_v4 = vld [vmem:[#allocation7] sm:$0xff]  ;;  %s655_s19 = smov [#allocation10]  }
  0x4b   :  { %470 = vmatprep.subr.bf16.mxu1 %v654_v1  ;;  %432 = vmatprep.mubr.msk.f32.mxu1 %vm653_vm0, %v652_v0  ;;  %v157_v5 = vld [vmem:[#allocation7 + $0x8] sm:$0xff]  ;;  %v158_v6 = vld [vmem:[#allocation7 + $0x10] sm:$0xff]  ;;  %v159_v7 = vld [vmem:[#allocation7 + $0x18] sm:$0xff]  ;;  %s344_s20 = sshll.u32 %s655_s19, 4  ;;  %s345_s20 = int_to_ptr.vmem [resolvable:$true] %s344_s20 }
  0x4c   :  { %396 = vmatpush3.msra.mxu0 %v76_v2  ;;  %v471_v8 = vpack.c.bf16 %v157_v5, %v156_v4  ;;  %v474_v9 = vpack.c.bf16 %v159_v7, %v158_v6  ;;  %v160_v10 = vld [vmem:[#allocation7 + $0x20] sm:$0xff]  ;;  %v161_v11 = vld [vmem:[#allocation7 + $0x28] sm:$0xff]  ;;  %v162_v13 = vld [vmem:[#allocation7 + $0x30] sm:$0xff]  ;;  %s616_s22 = scalar_lea.vmem %s345_s20, 128  ;;  %p621_p5 = scmp.lt.s32.totalorder %s345_s20, %s345_s20 }
  0x4d   :  { %398 = vmatmul.mubr.msk.f32.vlgmr.msra.gmra.mrb[0].mxu0 %vm81_vm1, %v75_v3  ;;  %494 = vmatprep.subr.bf16.mxu0 %v654_v1  ;;  %v477_v12 = vpack.c.bf16 %v161_v11, %v160_v10  ;;  %v163_v14 = vld [vmem:[#allocation7 + $0x38] sm:$0xff]  ;;  %v164_v16 = vld [vmem:[#allocation7 + $0x40] sm:$0xff]  ;;  %v165_v17 = vld [vmem:[#allocation7 + $0x48] sm:$0xff]  ;;  %p617_p4 = scmp.ne.s32.totalorder %s345_s20, %s616_s22  ;;  %p622_p6 = scmp.lt.s32.totalorder %s616_s22, %s616_s22 }
  0x4e   :  { %467 = vmatprep.mubr.msk.f32.mxu0 %vm653_vm0, %v652_v0  ;;  %472 = vmatpush3.bf16.msra.mxu1 %v471_v8  ;;  %v480_v15 = vpack.c.bf16 %v163_v14, %v162_v13  ;;  %v483_v18 = vpack.c.bf16 %v165_v17, %v164_v16  ;;  %v166_v19 = vld [vmem:[#allocation7 + $0x50] sm:$0xff]  ;;  %v167_v20 = vld [vmem:[#allocation7 + $0x58] sm:$0xff]  ;;  %v168_v22 = vld [vmem:[#allocation7 + $0x60] sm:$0xff] }
  0x4f   :  { %473 = vmatprep.subr.bf16.mxu1 %v654_v1  ;;  %v486_v21 = vpack.c.bf16 %v167_v20, %v166_v19  ;;  %v169_v23 = vld [vmem:[#allocation7 + $0x68] sm:$0xff]  ;;  %v170_v25 = vld [vmem:[#allocation7 + $0x70] sm:$0xff]  ;;  %v171_v26 = vld [vmem:[#allocation7 + $0x78] sm:$0xff]  ;;  %p623_p7 = por %p622_p6, %p621_p5 }
  0x50   :  { %v489_v24 = vpack.c.bf16 %v169_v23, %v168_v22  ;;  %v492_v27 = vpack.c.bf16 %v171_v26, %v170_v25  ;;  %v247_v28 = vld [vmem:[#allocation8] sm:$0xff]  ;;  %v248_v29 = vld [vmem:[#allocation8 + $0x8] sm:$0xff]  ;;  %v249_v30 = vld [vmem:[#allocation8 + $0x10] sm:$0xff] }
  0x51   :  { %v495_v31 = vpack.c.bf16 %v248_v29, %v247_v28  ;;  %v250_v32 = vld [vmem:[#allocation8 + $0x18] sm:$0xff]  ;;  %v251_v34 = vld [vmem:[#allocation8 + $0x20] sm:$0xff]  ;;  %v252_v35 = vld [vmem:[#allocation8 + $0x28] sm:$0xff]  ;;  %p624_p8 = pnand %p623_p7, %p617_p4 }
  0x52   :  { %475 = vmatpush3.bf16.msra.mxu1 %v474_v9  ;;  %v498_v33 = vpack.c.bf16 %v250_v32, %v249_v30  ;;  %v501_v36 = vpack.c.bf16 %v252_v35, %v251_v34  ;;  %v253_v37 = vld [vmem:[#allocation8 + $0x30] sm:$0xff]  ;;  %v254_v38 = vld [vmem:[#allocation8 + $0x38] sm:$0xff]  ;;  %v255_v40 = vld [vmem:[#allocation8 + $0x40] sm:$0xff] }
  0x53   :  { %476 = vmatprep.subr.bf16.mxu1 %v654_v1  ;;  %496 = vmatpush3.bf16.msra.mxu0 %v495_v31  ;;  %v504_v39 = vpack.c.bf16 %v254_v38, %v253_v37  ;;  %v256_v41 = vld [vmem:[#allocation8 + $0x48] sm:$0xff]  ;;  %v257_v43 = vld [vmem:[#allocation8 + $0x50] sm:$0xff]  ;;  %v258_v44 = vld [vmem:[#allocation8 + $0x58] sm:$0xff] }
  0x54   :  { %497 = vmatprep.subr.bf16.mxu0 %v654_v1  ;;  %v507_v42 = vpack.c.bf16 %v256_v41, %v255_v40  ;;  %v510_v45 = vpack.c.bf16 %v258_v44, %v257_v43  ;;  %v259_v46 = vld [vmem:[#allocation8 + $0x60] sm:$0xff]  ;;  %v260_v47 = vld [vmem:[#allocation8 + $0x68] sm:$0xff]  ;;  %v355_v49 = vld [vmem:[%s778_s4] ss:$0 sm:$0xff] }
  0x55   :  { %v513_v48 = vpack.c.bf16 %v260_v47, %v259_v46  ;;  %v261_v54 = vld [vmem:[#allocation8 + $0x70] sm:$0xff]  ;;  %v262_v55 = vld [vmem:[#allocation8 + $0x78] sm:$0xff] }
  0x56   :  { %478 = vmatpush3.bf16.msra.mxu1 %v477_v12  ;;  %v516_v56 = vpack.c.bf16 %v262_v55, %v261_v54  ;;  %v357_v57 = vld [vmem:[%s778_s4 + $0x1] ss:$0 sm:$0xff]  ;;  %v358_v62 = vld [vmem:[%s778_s4 + $0x2] ss:$0 sm:$0xff] }
  0x57   :  { %479 = vmatprep.subr.bf16.mxu1 %v654_v1  ;;  %499 = vmatpush3.bf16.msra.mxu0 %v498_v33 }
  0x58   :  { %500 = vmatprep.subr.bf16.mxu0 %v654_v1 }
  0x5a   :  { %481 = vmatpush3.bf16.msra.mxu1 %v480_v15 }
  0x5b   :  { %482 = vmatprep.subr.bf16.mxu1 %v654_v1  ;;  %502 = vmatpush3.bf16.msra.mxu0 %v501_v36 }
  0x5c   :  { %503 = vmatprep.subr.bf16.mxu0 %v654_v1 }
  0x5e   :  { %484 = vmatpush3.bf16.msra.mxu1 %v483_v18 }
  0x5f   :  { %485 = vmatprep.subr.bf16.mxu1 %v654_v1  ;;  %505 = vmatpush3.bf16.msra.mxu0 %v504_v39 }
  0x60   :  { %506 = vmatprep.subr.bf16.mxu0 %v654_v1 }
  0x62   :  { %487 = vmatpush3.bf16.msra.mxu1 %v486_v21 }
  0x63   :  { %488 = vmatprep.subr.bf16.mxu1 %v654_v1  ;;  %508 = vmatpush3.bf16.msra.mxu0 %v507_v42 }
  0x64   :  { %509 = vmatprep.subr.bf16.mxu0 %v654_v1 }
  0x66   :  { %490 = vmatpush3.bf16.msra.mxu1 %v489_v24 }
  0x67   :  { %491 = vmatprep.subr.bf16.mxu1 %v654_v1  ;;  %511 = vmatpush3.bf16.msra.mxu0 %v510_v45 }
  0x68   :  { %512 = vmatprep.subr.bf16.mxu0 %v654_v1 }
  0x6a   :  { %493 = vmatpush3.bf16.msra.mxu1 %v492_v27 }
  0x6b   :  { %514 = vmatpush3.bf16.msra.mxu0 %v513_v48 }
  0x6c   :  { %515 = vmatprep.subr.bf16.mxu0 %v654_v1 }
  0x6f   :  { %517 = vmatpush3.bf16.msra.mxu0 %v516_v56 }
 0x120   :  { %v151_v50 = vpop.f32.mrb[0].mxu0 }
 0x121   :  { %v152_v51 = vadd.f32 %v355_v49, %v151_v50  ;;  %v399_v52 = vpop.f32.mrb[1].mxu0 }
 0x123   :  { %v155_v53 = vmax.f32 %v152_v51, 0.0 }
 0x125   :  { %433 = vmatmul.mubr.f32.vlgmr.msra.gmra.mrb[0].mxu1 %v155_v53 }
 0x1f8   :  { %v242_v58 = vpop.f32.mrb[0].mxu1 }
 0x1f9   :  { %v243_v59 = vadd.f32 %v357_v57, %v242_v58  ;;  %v434_v60 = vpop.f32.mrb[1].mxu1 }
 0x1fb   :  { %v246_v61 = vmax.f32 %v243_v59, 0.0 }
 0x1fd   :  { %468 = vmatmul.mubr.f32.vlgmr.msra.gmra.mrb[2].mxu0 %v246_v61 }
 0x2d0   :  { %v333_v63 = vpop.f32.mrb[2].mxu0 }
 0x2d1   :  { %v334_v0 = vadd.f32 %v358_v62, %v333_v63  ;;  %v469_v1 = vpop.f32.mrb[3].mxu0 }
 0x2d3   :  { %337 = vst [vmem:[#allocation10] sm:$0xff] %v334_v0 }
 0x2d4   :  { %627 = shalt.err (!%p624_p8)
}
 0x2d5   :  { %s628_s25 = scalar_lea.hbm %s779_s5, 128 }
 0x2d6   :  { %p629_p9 = scmp.ne.s32.totalorder %s779_s5, %s628_s25  ;;  %p632_p10 = scmp.lt.u32.totalorder %s628_s25, %s779_s5 }
 0x2d8   :  { %p634_p11 = pnand %p632_p10, %p629_p9 }
 0x2da   :  { %637 = shalt.err (!%p634_p11)
}
 0x2db   :  { %347 = dma.vmem_to_hbm [thread:$0]  %s345_s20, 128, %s779_s5, [#allocation4]  }
 0x2dc   :  { %644 = dma.done.wait [#allocation4], 128  }
 0x2dd   :  { %645 = vsyncadd [#allocation4], 4294967168 }
 0x2de   :  { %351 = vsyncpa [#allocation3], 1 }
 0x2df   :  { %352 = vsyncpa [#allocation6], 1 }
 0x2e0   :  { %353 = vsyncpa [#allocation9], 1 }
 0x2e1   :  { %354 = vsyncpa [#allocation4], 1 }

</bundles_post_ra>
